<compile_context>
chip_gen: v7x
topology: tpu7x:2x2x1
jax: 0.10.0
libtpu: 0.0.40
codegen_flags: <defaults>
</compile_context>

<pallas_src>
import math
import functools

import jax
import jax.numpy as jnp
from jax.experimental import pallas as pl
from jax.experimental.pallas import tpu as pltpu


def _round_up(x, m):
    return (x + m - 1) // m * m


def _pick_row_tile(n):
    """Largest row tile (<=512) dividing n while keeping >=2 row tiles (megacore)."""
    for t in (512, 256, 128):
        if n % t == 0 and n // t >= 2:
            return t
    return 128 if n % 128 == 0 else n


def _pick_reduction_tile(n):
    """Largest reduction tile (<=1024) dividing n (amortizes per-step overhead)."""
    for t in (1024, 512, 256, 128):
        if n % t == 0:
            return t
    return n


# ---------------------------------------------------------------------------
# Kernel A: support = x @ W   (computed exactly once, tiled over node rows)
# ---------------------------------------------------------------------------
def support_kernel(x_ref, w_ref, out_ref):
    out_ref[...] = jnp.dot(
        x_ref[...], w_ref[...], preferred_element_type=jnp.float32
    ).astype(out_ref.dtype)


# ---------------------------------------------------------------------------
# Kernel B: out = adj @ support + bias
#   grid = (row tiles, reduction tiles over nodes)
#   Output block is resident across the reduction axis -> accumulate in-place.
# ---------------------------------------------------------------------------
def aggregate_kernel(adj_ref, s_ref, b_ref, out_ref):
    k = pl.program_id(1)

    @pl.when(k == 0)
    def _():
        out_ref[...] = jnp.zeros_like(out_ref)

    # adj streamed as bf16 (halves HBM traffic of the dominant N^2 stream);
    # accumulate in f32.
    adj_blk = adj_ref[...].astype(jnp.float32)
    out_ref[...] += jnp.dot(adj_blk, s_ref[...],
                            preferred_element_type=jnp.float32)

    @pl.when(k == pl.num_programs(1) - 1)
    def _():
        out_ref[...] += b_ref[...]


@functools.partial(jax.jit, static_argnames=("adj_dtype",))
def graph_convolution(x, adj, weight, bias, *, adj_dtype=jnp.bfloat16):
    N, f_in = x.shape
    f_out = weight.shape[1]
    assert adj.shape == (N, N)

    # Pad node dimension to a multiple of 128 (zero rows/cols are inert; the
    # extra output rows are sliced off below).
    n_pad = _round_up(N, 128)
    if n_pad != N:
        x = jnp.pad(x, ((0, n_pad - N), (0, 0)))
        adj = jnp.pad(adj, ((0, n_pad - N), (0, n_pad - N)))

    tile_n = _pick_row_tile(n_pad)        # output row tile (parallel axis)
    tile_k = _pick_reduction_tile(n_pad)  # adjacency reduction tile

    x = x.astype(jnp.float32)
    weight = weight.astype(jnp.float32)
    bias2d = bias.reshape(1, f_out).astype(jnp.float32)
    adj_c = adj.astype(adj_dtype)

    # ---- Kernel A: support = x @ W (once) ----
    support = pl.pallas_call(
        support_kernel,
        out_shape=jax.ShapeDtypeStruct((n_pad, f_out), jnp.float32),
        grid_spec=pltpu.PrefetchScalarGridSpec(
            num_scalar_prefetch=0,
            grid=(n_pad // tile_n,),
            in_specs=[
                pl.BlockSpec((tile_n, f_in), lambda i: (i, 0)),
                pl.BlockSpec((f_in, f_out), lambda i: (0, 0)),   # weight resident
            ],
            out_specs=pl.BlockSpec((tile_n, f_out), lambda i: (i, 0)),
        ),
        compiler_params=pltpu.CompilerParams(
            dimension_semantics=("parallel",),
        ),
    )(x, weight)

    # ---- Kernel B: out = adj @ support + bias ----
    out = pl.pallas_call(
        aggregate_kernel,
        out_shape=jax.ShapeDtypeStruct((n_pad, f_out), jnp.float32),
        grid_spec=pltpu.PrefetchScalarGridSpec(
            num_scalar_prefetch=0,
            grid=(n_pad // tile_n, n_pad // tile_k),
            in_specs=[
                # adj tile: rows follow the output row tile, cols follow reduction
                pl.BlockSpec((tile_n, tile_k), lambda i, k: (i, k)),
                # support tile for the node block being aggregated
                pl.BlockSpec((tile_k, f_out), lambda i, k: (k, 0)),
                # bias: (1, F_out), resident
                pl.BlockSpec((1, f_out), lambda i, k: (0, 0)),
            ],
            out_specs=pl.BlockSpec((tile_n, f_out), lambda i, k: (i, 0)),
        ),
        compiler_params=pltpu.CompilerParams(
            dimension_semantics=("parallel", "arbitrary"),
        ),
    )(adj_c, support, bias2d)

    return out[:N] if n_pad != N else out


def reference(x, adj, weight, bias, *, adj_dtype=jnp.bfloat16):
    # Matches the kernel's intentional bf16 quantization of the adjacency.
    adj_q = adj.astype(adj_dtype).astype(jnp.float32)
    support = jnp.dot(x, weight, precision=jax.lax.Precision.HIGHEST)
    out = jnp.dot(adj_q, support, precision=jax.lax.Precision.HIGHEST)
    return out + bias[None, :]


if __name__ == "__main__":
    # Small, MXU/vreg-friendly shapes.
    N, F_IN, F_OUT = 256, 128, 128

    key = jax.random.PRNGKey(0)
    k_x, k_adj, k_w, k_b = jax.random.split(key, 4)

    x = jax.random.normal(k_x, (N, F_IN), dtype=jnp.float32)

    # Dense (row-normalized) adjacency — torch.spmm semantics are just a matmul.
    adj_raw = (jax.random.uniform(k_adj, (N, N)) < 0.1).astype(jnp.float32)
    adj_raw = adj_raw + jnp.eye(N, dtype=jnp.float32)
    adj = adj_raw / jnp.sum(adj_raw, axis=1, keepdims=True)

    # Deterministic parameter init matching reset_parameters():
    #   uniform(-stdv, stdv) with stdv = 1 / sqrt(out_features)
    stdv = 1.0 / math.sqrt(F_OUT)
    weight = jax.random.uniform(
        k_w, (F_IN, F_OUT), minval=-stdv, maxval=stdv, dtype=jnp.float32
    )
    bias = jax.random.uniform(
        k_b, (F_OUT,), minval=-stdv, maxval=stdv, dtype=jnp.float32
    )

    out = graph_convolution(x, adj, weight, bias)
    out = jax.block_until_ready(out)

    ref = reference(x, adj, weight, bias)
    assert out.shape == (N, F_OUT)
    assert jnp.allclose(out, ref, atol=2e-3, rtol=2e-3), (
        f"mismatch vs reference (max abs err {jnp.max(jnp.abs(out - ref))})"
    )

    print("KERNEL_OK")
</pallas_src>

<mosaic_0001>
module attributes {stable_mosaic.version = 11 : i64} {
  func.func @support_kernel(%arg0: i32, %arg1: memref<128x128xf32, #tpu.memory_space<vmem>>, %arg2: memref<128x128xf32, #tpu.memory_space<vmem>>, %arg3: memref<128x128xf32, #tpu.memory_space<vmem>>) attributes {dimension_semantics = [#tpu.dimension_semantics<parallel>], iteration_bounds = array<i64: 2>, scalar_prefetch = 0 : i64, scratch_operands = 0 : i64, tpu.core_type = #tpu.core_type<tc>, window_params = [{transform_indices = @transform_0, window_bounds = array<i64: 128, 128>}, {pipeline_mode = #tpu.pipeline_mode<synchronous>, transform_indices = @transform_1, window_bounds = array<i64: 128, 128>}, {transform_indices = @transform_2, window_bounds = array<i64: 128, 128>}]} {
    %c0 = arith.constant 0 : index
    %c0_0 = arith.constant 0 : index
    %0 = vector.load %arg1[%c0, %c0_0] : memref<128x128xf32, #tpu.memory_space<vmem>>, vector<128x128xf32>
    %c0_1 = arith.constant 0 : index
    %c0_2 = arith.constant 0 : index
    %1 = vector.load %arg2[%c0_1, %c0_2] : memref<128x128xf32, #tpu.memory_space<vmem>>, vector<128x128xf32>
    %cst = arith.constant dense<0.000000e+00> : vector<128x128xf32>
    %2 = tpu.matmul %0, %1, %cst {dimension_numbers = #tpu.dot_dimension_numbers<[1], [0], [0], [1], [0, 0, 1, 1], [], []>} : vector<128x128xf32>, vector<128x128xf32>, vector<128x128xf32> -> vector<128x128xf32>
    %c0_3 = arith.constant 0 : index
    %c0_4 = arith.constant 0 : index
    %3 = vector.load %arg3[%c0_3, %c0_4] : memref<128x128xf32, #tpu.memory_space<vmem>>, vector<128x128xf32>
    tpu.vector_store %arg3[%c0_3, %c0_4], %2 {strides = array<i32>} : memref<128x128xf32, #tpu.memory_space<vmem>>, vector<128x128xf32>,
    return
  }
  func.func @transform_0(%arg0: i32) -> (i32, i32) {
    %c0_i32 = arith.constant 0 : i32
    %c0_i32_0 = arith.constant 0 : i32
    return %arg0, %c0_i32 : i32, i32
  }
  func.func @transform_1(%arg0: i32) -> (i32, i32) {
    %c0_i32 = arith.constant 0 : i32
    %c0_i32_0 = arith.constant 0 : i32
    %c0_i32_1 = arith.constant 0 : i32
    return %c0_i32, %c0_i32_0 : i32, i32
  }
  func.func @transform_2(%arg0: i32) -> (i32, i32) {
    %c0_i32 = arith.constant 0 : i32
    %c0_i32_0 = arith.constant 0 : i32
    return %arg0, %c0_i32 : i32, i32
  }
}

module attributes {stable_mosaic.version = 11 : i64} {
  func.func @aggregate_kernel(%arg0: i32, %arg1: i32, %arg2: memref<128x256xbf16, #tpu.memory_space<vmem>>, %arg3: memref<256x128xf32, #tpu.memory_space<vmem>>, %arg4: memref<1x128xf32, #tpu.memory_space<vmem>>, %arg5: memref<128x128xf32, #tpu.memory_space<vmem>>) attributes {dimension_semantics = [#tpu.dimension_semantics<parallel>, #tpu.dimension_semantics<arbitrary>], iteration_bounds = array<i64: 2, 1>, scalar_prefetch = 0 : i64, scratch_operands = 0 : i64, tpu.core_type = #tpu.core_type<tc>, window_params = [{transform_indices = @transform_0, window_bounds = array<i64: 128, 256>}, {transform_indices = @transform_1, window_bounds = array<i64: 256, 128>}, {pipeline_mode = #tpu.pipeline_mode<synchronous>, transform_indices = @transform_2, window_bounds = array<i64: 1, 128>}, {transform_indices = @transform_3, window_bounds = array<i64: 128, 128>}]} {
    %c0_i32 = arith.constant 0 : i32
    %0 = arith.cmpi eq, %arg1, %c0_i32 : i32
    %1 = arith.extui %0 : i1 to i32
    %c0_i32_0 = arith.constant 0 : i32
    %2 = arith.cmpi ne, %1, %c0_i32_0 : i32
    scf.if %2 {
      %cst_10 = arith.constant 0.000000e+00 : f32
      %13 = vector.broadcast %cst_10 : f32 to vector<128x128xf32>
      %c0_11 = arith.constant 0 : index
      %c0_12 = arith.constant 0 : index
      %14 = vector.load %arg5[%c0_11, %c0_12] : memref<128x128xf32, #tpu.memory_space<vmem>>, vector<128x128xf32>
      tpu.vector_store %arg5[%c0_11, %c0_12], %13 {strides = array<i32>} : memref<128x128xf32, #tpu.memory_space<vmem>>, vector<128x128xf32>,
    } else {
    }
    %c0 = arith.constant 0 : index
    %c0_1 = arith.constant 0 : index
    %3 = vector.load %arg2[%c0, %c0_1] : memref<128x256xbf16, #tpu.memory_space<vmem>>, vector<128x256xbf16>
    %4 = arith.extf %3 : vector<128x256xbf16> to vector<128x256xf32>
    %c0_2 = arith.constant 0 : index
    %c0_3 = arith.constant 0 : index
    %5 = vector.load %arg5[%c0_2, %c0_3] : memref<128x128xf32, #tpu.memory_space<vmem>>, vector<128x128xf32>
    %c0_4 = arith.constant 0 : index
    %c0_5 = arith.constant 0 : index
    %6 = vector.load %arg3[%c0_4, %c0_5] : memref<256x128xf32, #tpu.memory_space<vmem>>, vector<256x128xf32>
    %cst = arith.constant dense<0.000000e+00> : vector<128x128xf32>
    %7 = tpu.matmul %4, %6, %cst {dimension_numbers = #tpu.dot_dimension_numbers<[1], [0], [0], [1], [0, 0, 1, 1], [], []>} : vector<128x256xf32>, vector<256x128xf32>, vector<128x128xf32> -> vector<128x128xf32>
    %8 = arith.addf %5, %7 : vector<128x128xf32>
    %c0_6 = arith.constant 0 : index
    %c0_7 = arith.constant 0 : index
    %9 = vector.load %arg5[%c0_6, %c0_7] : memref<128x128xf32, #tpu.memory_space<vmem>>, vector<128x128xf32>
    tpu.vector_store %arg5[%c0_6, %c0_7], %8 {strides = array<i32>} : memref<128x128xf32, #tpu.memory_space<vmem>>, vector<128x128xf32>,
    %c0_i32_8 = arith.constant 0 : i32
    %10 = arith.cmpi eq, %arg1, %c0_i32_8 : i32
    %11 = arith.extui %10 : i1 to i32
    %c0_i32_9 = arith.constant 0 : i32
    %12 = arith.cmpi ne, %11, %c0_i32_9 : i32
    scf.if %12 {
      %c0_10 = arith.constant 0 : index
      %c0_11 = arith.constant 0 : index
      %13 = vector.load %arg5[%c0_10, %c0_11] : memref<128x128xf32, #tpu.memory_space<vmem>>, vector<128x128xf32>
      %c0_12 = arith.constant 0 : index
      %c0_13 = arith.constant 0 : index
      %14 = vector.load %arg4[%c0_12, %c0_13] : memref<1x128xf32, #tpu.memory_space<vmem>>, vector<1x128xf32>
      %15 = vector.broadcast %14 : vector<1x128xf32> to vector<128x128xf32>
      %16 = arith.addf %13, %15 : vector<128x128xf32>
      %c0_14 = arith.constant 0 : index
      %c0_15 = arith.constant 0 : index
      %17 = vector.load %arg5[%c0_14, %c0_15] : memref<128x128xf32, #tpu.memory_space<vmem>>, vector<128x128xf32>
      tpu.vector_store %arg5[%c0_14, %c0_15], %16 {strides = array<i32>} : memref<128x128xf32, #tpu.memory_space<vmem>>, vector<128x128xf32>,
    } else {
    }
    return
  }
  func.func @transform_0(%arg0: i32, %arg1: i32) -> (i32, i32) {
    %c0_i32 = arith.constant 0 : i32
    return %arg0, %arg1 : i32, i32
  }
  func.func @transform_1(%arg0: i32, %arg1: i32) -> (i32, i32) {
    %c0_i32 = arith.constant 0 : i32
    %c0_i32_0 = arith.constant 0 : i32
    return %arg1, %c0_i32 : i32, i32
  }
  func.func @transform_2(%arg0: i32, %arg1: i32) -> (i32, i32) {
    %c0_i32 = arith.constant 0 : i32
    %c0_i32_0 = arith.constant 0 : i32
    %c0_i32_1 = arith.constant 0 : i32
    return %c0_i32, %c0_i32_0 : i32, i32
  }
  func.func @transform_3(%arg0: i32, %arg1: i32) -> (i32, i32) {
    %c0_i32 = arith.constant 0 : i32
    %c0_i32_0 = arith.constant 0 : i32
    return %arg0, %c0_i32 : i32, i32
  }
}

</mosaic_0001>

<bundles_post_ra>
// kernel: graph_convolution.2
= control target key start
LH: loop header
LB: loop body
LE: loop exit
PB: predicated region body
PF: predicated region fallthrough
CT: control target
= control target key end

     0   :  { %7 = vsyncpa [#allocation3], 0  ;;  %s959_s0 = inlined_call_operand.hbm [shape: f32[256,128], index: 0, kind: input, shape index: {}]   ;;  %s960_s1 = inlined_call_operand.hbm [shape: f32[128,128], index: 1, kind: input, shape index: {}]   ;;  %s961_s2 = inlined_call_operand.vmem [shape: f32[256,128], index: 2, kind: output, shape index: {}]  }
   0x1   :  { %9 = vsyncpa [#allocation3 + $0x1], 0 }
   0x2   :  { %10 = vsyncpa [#allocation5], 0  ;;  %s772_s9 = smov 0   ;;  %s774_s10 = smov 0  }
   0x3   :  { %s776_s11 = smov 0   ;;  %s778_s12 = smov 0  }
   0x4 LB: > { %s451_s13 = sadd.s32 4294967295, %s751_s12   ;;  %p36_p0 = scmp.ne.s32.totalorder %s743_s10, %s739_s9  ;;  %s751_s12 = sphi %s778_s12, %s977_s12   ;;  %s747_s11 = sphi %s776_s11, %s976_s11   ;;  %s743_s10 = sphi %s774_s10, %s975_s10   ;;  %s739_s9 = sphi %s772_s9, %s974_s9  }
   0x5   : > { %p794_p1 = scmp.eq.s32.totalorder %s451_s13, 0  ;;  %p453_p2 = scmp.ge.s32.totalorder %s751_s12, 1 }
   0x6   : > { %p94_p3 = scmp.lt.s32.totalorder %s751_s12, 3  ;;  %s753_s17 = smov [#allocation4]  }
   0x7   : > { %s966_s14 = scalar_select %p794_p1, 1, 0 }
   0x8   : > { %p802_p4 = por %p794_p1, %p36_p0  ;;  %p806_p5 = pnand %p453_p2, %p94_p3 }
   0x9   : > { %s106_s18 = sshll.u32 %s753_s17, 4  ;;  %s819_s20 = sadd.s32 1, %s751_s12   ;;  %s107_s18 = int_to_ptr.vmem [resolvable:$true] %s106_s18 }
   0xa   : > { %s967_s15 = scalar_select %p802_p4, 1, 0 }
   0xb   : > { %s968_s16 = scalar_select %p806_p5, 1, 0 }
   0xc   : > { %p609_p6 = pneg %p806_p5  ;;  %s23_s21 = sadd.s32 1, %s747_s11 }
   0xd   : > { %s20_s22 = ssub.s32 %s751_s12, %s819_s20  ;;  %s655_s25 = scalar_lea.hbm %s960_s1, 2048 }
   0xe   : > { %p814_p7 = pnand %p609_p6, %p794_p1  ;;  %p656_p8 = scmp.ne.s32.totalorder %s960_s1, %s655_s25 }
   0xf   : > { %p662_p12 = scmp.lt.u32.totalorder %s655_s25, %s960_s1 }
  0x10   : > { %p657_p9 = pneg %p814_p7 }
  0x12   : > { %p658_p10 = pnand %p657_p9, %p656_p8 }
  0x14   : > { %p659_p11 = pneg %p658_p10 }
  0x16   : > { %p664_p13 = pnand %p662_p12, %p659_p11 }
  0x18   : > { %667 = shalt.err (!%p664_p13)
}
  0x19   : > { %s668_s30 = scalar_lea.vmem %s107_s18, 2048  ;;  %p676_p6 = scmp.lt.s32.totalorder %s107_s18, %s107_s18 }
  0x1a   : > { %p669_p0 = scmp.ne.s32.totalorder %s107_s18, %s668_s30  ;;  %p677_p1 = scmp.lt.s32.totalorder %s668_s30, %s668_s30 }
  0x1c   : > { %p671_p2 = pnand %p669_p0, %p657_p9  ;;  %p678_p4 = por %p677_p1, %p676_p6 }
  0x1e   : > { %p672_p3 = pneg %p671_p2 }
  0x20   : > { %p679_p5 = pnand %p678_p4, %p672_p3 }
  0x22   : > { %682 = shalt.err (!%p679_p5)
}
  0x23   : > { %s754_s3 = smov 128   ;;  %s755_s4 = smov 8  }
  0x24   : > { %612 = dma.hbm_to_vmem [thread:$0]  (!%p814_p7), %s960_s1, 2048, %s107_s18, [#allocation5], %s754_s3, %s754_s3, %s755_s4  }
  0x25   : > { %p21_p1 = scmp.eq.s32.totalorder %s20_s22, 0  ;;  %p30_p4 = scmp.ne.s32.totalorder %s747_s11, %s743_s10 }
  0x26   : > { %p31_p5 = scmp.eq.s32.totalorder %s751_s12, 0  ;;  %p618_p8 = scmp.lt.s32.totalorder %s751_s12, 2 }
  0x27   : > { %s848_s7 = scalar_select %p21_p1, %s747_s11, %s23_s21  }
  0x28   : > { %p32_p9 = por %p31_p5, %p30_p4  ;;  %s120_s8 = sand.u32 1, %s747_s11  }
  0x29   : > { %s456_s9 = sshll.u32 %s120_s8, 7  ;;  %s466_s17 = sshll.u32 %s751_s12, 11 }
  0x2a   : > { %s855_s19 = scalar_lea.hbm %s959_s0, %s466_s17  ;;  %s124_s18 = scalar_lea.vmem [#allocation2], %s456_s9 }
  0x2b   : > { %s131_s22 = sshll.u32 %s124_s18, 4  ;;  %p859_p7 = pnand %p618_p8, %p32_p9  ;;  %s857_s22 = int_to_ptr.vmem [resolvable:$true] %s131_s22 }
  0x2c   : > { %s863_s25 = scalar_lea.sflag [#allocation3], %s120_s8  ;;  %s683_s26 = scalar_lea.hbm %s855_s19, 2048 }
  0x2d   : > { %p684_p10 = scmp.ne.s32.totalorder %s855_s19, %s683_s26  ;;  %p685_p11 = pneg %p859_p7 }
  0x2e   : > { %s688_s29 = scalar_lea.hbm %s959_s0, 4096  ;;  %p689_p0 = scmp.lt.u32.totalorder %s855_s19, %s959_s0 }
  0x2f   : > { %p686_p12 = pnand %p685_p11, %p684_p10  ;;  %p690_p2 = scmp.lt.u32.totalorder %s688_s29, %s683_s26 }
  0x30   : > { %p692_p6 = scmp.lt.u32.totalorder %s683_s26, %s855_s19 }
  0x31   : > { %p687_p13 = pneg %p686_p12  ;;  %p691_p3 = por %p690_p2, %p689_p0 }
  0x33   : > { %p693_p1 = por %p692_p6, %p691_p3 }
  0x35   : > { %p694_p4 = pnand %p693_p1, %p687_p13 }
  0x37   : > { %697 = shalt.err (!%p694_p4)
}
  0x38   : > { %s698_s6 = scalar_lea.vmem %s857_s22, 2048  ;;  %s756_s8 = smov [#allocation2]  }
  0x39   : > { %p699_p5 = scmp.ne.s32.totalorder %s857_s22, %s698_s6  ;;  %s703_s9 = sshll.u32 %s756_s8, 4  ;;  %s704_s9 = int_to_ptr.vmem [resolvable:$false] %s703_s9 }
  0x3a   : > { %s705_s17 = scalar_lea.vmem %s704_s9, 4096  ;;  %p706_p10 = scmp.lt.s32.totalorder %s857_s22, %s704_s9 }
  0x3b   : > { %p701_p8 = pnand %p699_p5, %p685_p11  ;;  %p707_p12 = scmp.lt.s32.totalorder %s705_s17, %s698_s6 }
  0x3d   : > { %p702_p9 = pneg %p701_p8  ;;  %p708_p0 = por %p707_p12, %p706_p10 }
  0x3f   : > { %p709_p2 = pnand %p708_p0, %p702_p9 }
  0x41   : > { %712 = shalt.err (!%p709_p2)
}
  0x42   : > { %616 = dma.hbm_to_vmem [thread:$0]  (!%p859_p7), %s855_s19, 2048, %s857_s22, %s863_s25, %s754_s3, %s754_s3, %s755_s4  }
  0x43   : > { %p971_p11 = scmp.ne.s32.totalorder %s968_s16, 0 }
  0x44   : > { %s145_s23 = sand.u32 (!%p971_p11), 1, %s743_s10   ;;  %p972_p13 = scmp.ne.s32.totalorder (!%p971_p11), %s967_s15, 0 }
  0x45   : > { %143 = sbr.rel (%p971_p11) target bundleno = 341 (0x155), region = 28  ;;  %s460_s24 = sshll.u32 (!%p971_p11), %s145_s23, 7 }
  0x46   : > { %s146_s18 = scalar_lea.sflag (!%p971_p11), [#allocation3], %s145_s23  ;;  %s897_s26 = scalar_lea.vmem (!%p971_p11), [#allocation2], %s460_s24 }
  0x4c   : > { %730 = dma.done.wait (%p972_p13), %s146_s18, 2048  }
  0x4d   : > { %732 = vsyncadd (%p972_p13), %s146_s18, 4294965248  ;;  %p973_p3 = scmp.ne.s32.totalorder %s966_s14, 0 }
  0x4f   : > { %734 = dma.done.wait (%p973_p3), [#allocation5], 2048  }
  0x50   : > { %736 = vsyncadd (%p973_p3), [#allocation5], 4294965248  ;;  %v197_v0 = vld [vmem:[#allocation4] sm:$0xff]  ;;  %v198_v1 = vld [vmem:[#allocation4 + $0x8] sm:$0xff]  ;;  %s462_s14 = sshll.u32 %s451_s13, 4 }
  0x51   : > { %v199_v2 = vld [vmem:[#allocation4 + $0x10] sm:$0xff]  ;;  %v555_v3 = vpack.c.bf16 %v198_v1, %v197_v0  ;;  %v200_v4 = vld [vmem:[#allocation4 + $0x18] sm:$0xff]  ;;  %v201_v6 = vld [vmem:[#allocation4 + $0x20] sm:$0xff]  ;;  %p176_p7 = scmp.lt.s32.totalorder %s462_s14, 31 }
  0x52   : > { %v559_v5 = vpack.c.bf16 %v200_v4, %v199_v2  ;;  %v202_v7 = vld [vmem:[#allocation4 + $0x28] sm:$0xff]  ;;  %v181_v9 = vld [vmem:[%s897_s26] sm:$0xff]  ;;  %v203_v11 = vld [vmem:[#allocation4 + $0x30] sm:$0xff] }
  0x53   : > { %556 = vmatprep.subr.bf16.mxu0 %v555_v3  ;;  %587 = vmatprep.subr.bf16.mxu1 %v555_v3  ;;  %v563_v8 = vpack.c.bf16 %v202_v7, %v201_v6  ;;  %v189_v10 = vld [vmem:[%s897_s26 + $0x40] sm:$0xff]  ;;  %v204_v12 = vld [vmem:[#allocation4 + $0x38] sm:$0xff]  ;;  %v206_v15 = vld [vmem:[#allocation4 + $0x48] sm:$0xff]  ;;  %s979_s14 = smov (!%p176_p7, %s462_s14), 31 }
  0x54   : > { %558 = vmatpush3.bf16.msra.mxu0 %v555_v3  ;;  %595 = vmatpush3.bf16.msra.mxu1 %v555_v3  ;;  %v567_v13 = vpack.c.bf16 %v204_v12, %v203_v11  ;;  %v205_v14 = vld [vmem:[#allocation4 + $0x40] sm:$0xff]  ;;  %v207_v17 = vld [vmem:[#allocation4 + $0x50] sm:$0xff]  ;;  %v208_v18 = vld [vmem:[#allocation4 + $0x58] sm:$0xff]  ;;  %s463_s15 = sshll.u32 %s979_s14, 3 }
  0x55   : > { %560 = vmatprep.subr.bf16.mxu0 %v559_v5  ;;  %588 = vmatprep.subr.bf16.mxu1 %v559_v5  ;;  %v571_v16 = vpack.c.bf16 %v206_v15, %v205_v14  ;;  %v575_v19 = vpack.c.bf16 %v208_v18, %v207_v17  ;;  %v209_v20 = vld [vmem:[#allocation4 + $0x60] sm:$0xff]  ;;  %v210_v21 = vld [vmem:[#allocation4 + $0x68] sm:$0xff]  ;;  %v211_v23 = vld [vmem:[#allocation4 + $0x70] sm:$0xff]  ;;  %s928_s4 = scalar_lea.vmem %s961_s2, %s463_s15 }
  0x56   : > { %531 = vmatprep.mubr.f32.mxu0 %v181_v9  ;;  %543 = vmatprep.mubr.f32.mxu1 %v189_v10  ;;  %v579_v22 = vpack.c.bf16 %v210_v21, %v209_v20  ;;  %v212_v24 = vld [vmem:[#allocation4 + $0x78] sm:$0xff]  ;;  %v182_v26 = vld [vmem:[%s897_s26 + $0x8] sm:$0xff]  ;;  %v183_v28 = vld [vmem:[%s897_s26 + $0x10] sm:$0xff] }
  0x57   : > { %v583_v25 = vpack.c.bf16 %v212_v24, %v211_v23  ;;  %v190_v27 = vld [vmem:[%s897_s26 + $0x48] sm:$0xff]  ;;  %v191_v29 = vld [vmem:[%s897_s26 + $0x50] sm:$0xff]  ;;  %v184_v30 = vld [vmem:[%s897_s26 + $0x18] sm:$0xff] }
  0x58   : > { %562 = vmatpush3.bf16.msra.mxu0 %v559_v5  ;;  %596 = vmatpush3.bf16.msra.mxu1 %v559_v5  ;;  %v192_v31 = vld [vmem:[%s897_s26 + $0x58] sm:$0xff]  ;;  %v185_v32 = vld [vmem:[%s897_s26 + $0x20] sm:$0xff]  ;;  %v186_v34 = vld [vmem:[%s897_s26 + $0x28] sm:$0xff] }
  0x59   : > { %564 = vmatprep.subr.bf16.mxu0 %v563_v8  ;;  %589 = vmatprep.subr.bf16.mxu1 %v563_v8  ;;  %v193_v33 = vld [vmem:[%s897_s26 + $0x60] sm:$0xff]  ;;  %v194_v35 = vld [vmem:[%s897_s26 + $0x68] sm:$0xff]  ;;  %v187_v36 = vld [vmem:[%s897_s26 + $0x30] sm:$0xff] }
  0x5a   : > { %v195_v37 = vld [vmem:[%s897_s26 + $0x70] sm:$0xff]  ;;  %v188_v38 = vld [vmem:[%s897_s26 + $0x38] sm:$0xff] }
  0x5b   : > { %v196_v39 = vld [vmem:[%s897_s26 + $0x78] sm:$0xff] }
  0x5c   : > { %566 = vmatpush3.bf16.msra.mxu0 %v563_v8  ;;  %597 = vmatpush3.bf16.msra.mxu1 %v563_v8 }
  0x5d   : > { %568 = vmatprep.subr.bf16.mxu0 %v567_v13  ;;  %590 = vmatprep.subr.bf16.mxu1 %v567_v13 }
  0x60   : > { %570 = vmatpush3.bf16.msra.mxu0 %v567_v13  ;;  %598 = vmatpush3.bf16.msra.mxu1 %v567_v13 }
  0x61   : > { %572 = vmatprep.subr.bf16.mxu0 %v571_v16  ;;  %591 = vmatprep.subr.bf16.mxu1 %v571_v16 }
  0x64   : > { %574 = vmatpush3.bf16.msra.mxu0 %v571_v16  ;;  %599 = vmatpush3.bf16.msra.mxu1 %v571_v16 }
  0x65   : > { %576 = vmatprep.subr.bf16.mxu0 %v575_v19  ;;  %592 = vmatprep.subr.bf16.mxu1 %v575_v19 }
  0x68   : > { %578 = vmatpush3.bf16.msra.mxu0 %v575_v19  ;;  %600 = vmatpush3.bf16.msra.mxu1 %v575_v19 }
  0x69   : > { %580 = vmatprep.subr.bf16.mxu0 %v579_v22  ;;  %593 = vmatprep.subr.bf16.mxu1 %v579_v22 }
  0x6c   : > { %582 = vmatpush3.bf16.msra.mxu0 %v579_v22  ;;  %601 = vmatpush3.bf16.msra.mxu1 %v579_v22 }
  0x6d   : > { %584 = vmatprep.subr.bf16.mxu0 %v583_v25  ;;  %594 = vmatprep.subr.bf16.mxu1 %v583_v25 }
  0x70   : > { %586 = vmatpush3.bf16.msra.mxu0 %v583_v25  ;;  %602 = vmatpush3.bf16.msra.mxu1 %v583_v25 }
  0x73   : > { %532 = vmatmul.mubr.f32.vlgmr.msra.gmra.mrb[0].mxu0 %v182_v26  ;;  %544 = vmatmul.mubr.f32.vlgmr.msra.gmra.mrb[0].mxu1 %v190_v27 }
  0x74   : > { %534 = vmatprep.mubr.f32.mxu0 %v183_v28  ;;  %546 = vmatprep.mubr.f32.mxu1 %v191_v29 }
  0x77   : > { %535 = vmatmul.mubr.f32.gmra.mrb[2].mxu0 %v184_v30  ;;  %547 = vmatmul.mubr.f32.gmra.mrb[2].mxu1 %v192_v31 }
  0x78   : > { %537 = vmatprep.mubr.f32.mxu0 %v185_v32  ;;  %549 = vmatprep.mubr.f32.mxu1 %v193_v33 }
  0x7b   : > { %538 = vmatmul.mubr.f32.gmra.mrb[4].mxu0 %v186_v34  ;;  %550 = vmatmul.mubr.f32.gmra.mrb[4].mxu1 %v194_v35 }
  0x7c   : > { %540 = vmatprep.mubr.f32.mxu0 %v187_v36  ;;  %552 = vmatprep.mubr.f32.mxu1 %v195_v37 }
  0x7f   : > { %541 = vmatmul.mubr.f32.gmra.mrb[6].mxu0 %v188_v38  ;;  %553 = vmatmul.mubr.f32.gmra.mrb[6].mxu1 %v196_v39 }
 0x146   : > { %v533_v40 = vpop.f32.mrb[0].mxu0  ;;  %v545_v41 = vpop.f32.mrb[0].mxu1 }
 0x147   : > { %359 = vst [vmem:[%s928_s4 + $0x8] sm:$0xff] %v533_v40  ;;  %367 = vst [vmem:[%s928_s4 + $0x48] sm:$0xff] %v545_v41  ;;  %v279_v42 = vpop.f32.mrb[1].mxu0  ;;  %v319_v43 = vpop.f32.mrb[1].mxu1 }
 0x148   : > { %358 = vst [vmem:[%s928_s4] sm:$0xff] %v279_v42  ;;  %366 = vst [vmem:[%s928_s4 + $0x40] sm:$0xff] %v319_v43 }
 0x14a   : > { %v536_v44 = vpop.f32.mrb[2].mxu0  ;;  %v548_v45 = vpop.f32.mrb[2].mxu1 }
 0x14b   : > { %361 = vst [vmem:[%s928_s4 + $0x18] sm:$0xff] %v536_v44  ;;  %369 = vst [vmem:[%s928_s4 + $0x58] sm:$0xff] %v548_v45  ;;  %v289_v46 = vpop.f32.mrb[3].mxu0  ;;  %v329_v47 = vpop.f32.mrb[3].mxu1 }
 0x14c   : > { %360 = vst [vmem:[%s928_s4 + $0x10] sm:$0xff] %v289_v46  ;;  %368 = vst [vmem:[%s928_s4 + $0x50] sm:$0xff] %v329_v47 }
 0x14e   : > { %v539_v48 = vpop.f32.mrb[4].mxu0  ;;  %v551_v49 = vpop.f32.mrb[4].mxu1 }
 0x14f   : > { %363 = vst [vmem:[%s928_s4 + $0x28] sm:$0xff] %v539_v48  ;;  %371 = vst [vmem:[%s928_s4 + $0x68] sm:$0xff] %v551_v49  ;;  %v299_v50 = vpop.f32.mrb[5].mxu0  ;;  %v339_v51 = vpop.f32.mrb[5].mxu1 }
 0x150   : > { %362 = vst [vmem:[%s928_s4 + $0x20] sm:$0xff] %v299_v50  ;;  %370 = vst [vmem:[%s928_s4 + $0x60] sm:$0xff] %v339_v51 }
 0x152   : > { %v542_v52 = vpop.f32.mrb[6].mxu0  ;;  %v554_v53 = vpop.f32.mrb[6].mxu1 }
 0x153   : > { %365 = vst [vmem:[%s928_s4 + $0x38] sm:$0xff] %v542_v52  ;;  %373 = vst [vmem:[%s928_s4 + $0x78] sm:$0xff] %v554_v53  ;;  %v309_v54 = vpop.f32.mrb[7].mxu0  ;;  %v349_v55 = vpop.f32.mrb[7].mxu1 }
 0x154   : > { %364 = vst [vmem:[%s928_s4 + $0x30] sm:$0xff] %v309_v54  ;;  %372 = vst [vmem:[%s928_s4 + $0x70] sm:$0xff] %v349_v55 }
 0x155 PF: > { %p13_p6 = scmp.ge.s32.totalorder %s819_s20, 4   ;;  %s974_s9 = smov %s743_s10 }
 0x156   : > { %s975_s10 = smov %s747_s11  ;;  %s976_s11 = smov %s848_s7 }
 0x157   : > { %s977_s12 = smov %s819_s20  ;;  %15 = sbr.rel (!%p13_p6) target bundleno = 4 (0x4), region = 72 }
 0x15e   :  { %396 = vsyncpa [#allocation3], 1 }
 0x15f   :  { %398 = vsyncpa [#allocation3 + $0x1], 1 }
 0x160   :  { %399 = vsyncpa [#allocation5], 1 }

// kernel: graph_convolution.3
= control target key start
LH: loop header
LB: loop body
LE: loop exit
PB: predicated region body
PF: predicated region fallthrough
CT: control target
= control target key end

     0   :  { %8 = vsyncpa [#allocation3], 0  ;;  %s1260_s0 = inlined_call_operand.vmem [shape: bf16[256,256], index: 0, kind: input, shape index: {}]   ;;  %s1261_s1 = inlined_call_operand.vmem [shape: f32[256,128], index: 1, kind: input, shape index: {}]   ;;  %s1262_s2 = inlined_call_operand.vmem [shape: f32[1,128], index: 2, kind: input, shape index: {}]   ;;  %s1263_s3 = inlined_call_operand.hbm [shape: f32[256,128], index: 3, kind: output, shape index: {}]  }
   0x1   :  { %10 = vsyncpa [#allocation3 + $0x1], 0  ;;  %s988_s12 = smov 0   ;;  %s990_s13 = smov 0  }
   0x2   :  { %s992_s14 = smov 0   ;;  %s994_s15 = smov 0  }
   0x3   :  { %s996_s16 = smov 0   ;;  %s998_s17 = smov 0  }
   0x4 LB: > { %s681_s18 = sadd.s32 4294967295, %s963_s17   ;;  %s682_s19 = sadd.s32 4294967294, %s963_s17   ;;  %s963_s17 = sphi %s998_s17, %s16_s17   ;;  %s959_s16 = sphi %s996_s16, %s1270_s16   ;;  %s955_s15 = sphi %s994_s15, %s1269_s15   ;;  %s951_s14 = sphi %s992_s14, %s1268_s14   ;;  %s947_s13 = sphi %s990_s13, %s1267_s13   ;;  %s943_s12 = sphi %s988_s12, %s1266_s12  }
   0x5   : > { %s28_s20 = sadd.s32 1, %s959_s16  ;;  %s110_s21 = sadd.s32 1, %s951_s14 }
   0x6   : > { %p30_p0 = scmp.ge.s32.totalorder %s28_s20, 2  ;;  %p120_p1 = scmp.ne.s32.totalorder %s951_s14, %s947_s13 }
   0x7   : > { %p121_p2 = scmp.eq.s32.totalorder %s681_s18, 1  ;;  %p126_p3 = scmp.ne.s32.totalorder %s947_s13, %s943_s12 }
   0x8   : > { %s1272_s20 = smov (%p30_p0, %s28_s20), 0  ;;  %p127_p5 = scmp.eq.s32.totalorder %s682_s19, 1 }
   0x9   : > { %p1028_p4 = por %p121_p2, %p120_p1  ;;  %s107_s23 = ssub.s32 %s959_s16, %s1272_s20 }
   0xa   : > { %p686_p6 = scmp.ge.s32.totalorder %s963_s17, 1  ;;  %p108_p7 = scmp.eq.s32.totalorder %s107_s23, 0 }
   0xb   : > { %p1035_p8 = por %p127_p5, %p126_p3  ;;  %p172_p9 = scmp.lt.s32.totalorder %s963_s17, 3 }
   0xc   : > { %s1041_s25 = scalar_select %p108_p7, %s951_s14, %s110_s21  }
   0xd   : > { %p173_p10 = pnand %p686_p6, %p172_p9 }
   0xe   : > { %v325_v0 = vld [vmem:[%s1261_s1 + $0x80] sm:$0xff] (!%p173_p10)  ;;  %v326_v1 = vld [vmem:[%s1261_s1 + $0x88] sm:$0xff] (!%p173_p10)  ;;  %s688_s5 = sshll.u32 (!%p173_p10), %s955_s15, 4  ;;  %v327_v5 = vld [vmem:[%s1261_s1 + $0x90] sm:$0xff] (!%p173_p10)  ;;  %s203_s29 = sand.u32 (!%p173_p10), 1, %s947_s13  }
   0xf   : > { %176 = sbr.rel (%p173_p10) target bundleno = 309 (0x135), region = 32  ;;  %v309_v2 = vld [vmem:[%s1261_s1] sm:$0xff] (!%p173_p10)  ;;  %v779_v3 = vpack.c.bf16 (!%p173_p10), %v326_v1, %v325_v0  ;;  %v310_v4 = vld [vmem:[%s1261_s1 + $0x8] sm:$0xff] (!%p173_p10)  ;;  %v328_v6 = vld [vmem:[%s1261_s1 + $0x98] sm:$0xff] (!%p173_p10)  ;;  %p208_p11 = scmp.lt.s32.totalorder (!%p173_p10), %s688_s5, 31 }
  0x10   : > { %v781_v7 = vpack.c.bf16 (!%p173_p10), %v310_v4, %v309_v2  ;;  %v783_v8 = vpack.c.bf16 (!%p173_p10), %v328_v6, %v327_v5  ;;  %v311_v9 = vld [vmem:[%s1261_s1 + $0x10] sm:$0xff] (!%p173_p10)  ;;  %v312_v10 = vld [vmem:[%s1261_s1 + $0x18] sm:$0xff] (!%p173_p10)  ;;  %v329_v11 = vld [vmem:[%s1261_s1 + $0xa0] sm:$0xff] (!%p173_p10)  ;;  %s698_s7 = sshll.u32 (!%p173_p10), %s955_s15, 11  ;;  %s1214_s15 = scalar_lea.sflag (!%p173_p10), [#allocation3], %s203_s29 }
  0x11   : > { %780 = vmatprep.subr.bf16.mxu0 (!%p173_p10), %v779_v3  ;;  %811 = vmatprep.subr.bf16.mxu1 (!%p173_p10), %v779_v3  ;;  %v330_v12 = vld [vmem:[%s1261_s1 + $0xa8] sm:$0xff] (!%p173_p10)  ;;  %v785_v13 = vpack.c.bf16 (!%p173_p10), %v312_v10, %v311_v9  ;;  %v313_v15 = vld [vmem:[%s1261_s1 + $0x20] sm:$0xff] (!%p173_p10)  ;;  %v331_v17 = vld [vmem:[%s1261_s1 + $0xb0] sm:$0xff] (!%p173_p10)  ;;  %s1204_s11 = scalar_lea.hbm (!%p173_p10), %s1263_s3, %s698_s7  ;;  %s965_s19 = smov (!%p173_p10), [#allocation2]  }
  0x12   : > { %782 = vmatpush3.bf16.msra.mxu0 (!%p173_p10), %v781_v7  ;;  %819 = vmatpush3.bf16.msra.mxu1 (!%p173_p10), %v781_v7  ;;  %v787_v14 = vpack.c.bf16 (!%p173_p10), %v330_v12, %v329_v11  ;;  %v314_v16 = vld [vmem:[%s1261_s1 + $0x28] sm:$0xff] (!%p173_p10)  ;;  %v332_v18 = vld [vmem:[%s1261_s1 + $0xb8] sm:$0xff] (!%p173_p10)  ;;  %v315_v21 = vld [vmem:[%s1261_s1 + $0x30] sm:$0xff] (!%p173_p10)  ;;  %s889_s21 = sshll.u32 (!%p173_p10), %s965_s19, 4  ;;  %s890_s21 = int_to_ptr.vmem [resolvable:$false] %s889_s21 }
  0x13   : > { %784 = vmatprep.subr.bf16.mxu0 (!%p173_p10), %v783_v8  ;;  %812 = vmatprep.subr.bf16.mxu1 (!%p173_p10), %v783_v8  ;;  %v789_v19 = vpack.c.bf16 (!%p173_p10), %v314_v16, %v313_v15  ;;  %v791_v20 = vpack.c.bf16 (!%p173_p10), %v332_v18, %v331_v17  ;;  %v316_v22 = vld [vmem:[%s1261_s1 + $0x38] sm:$0xff] (!%p173_p10)  ;;  %v333_v23 = vld [vmem:[%s1261_s1 + $0xc0] sm:$0xff] (!%p173_p10)  ;;  %v334_v24 = vld [vmem:[%s1261_s1 + $0xc8] sm:$0xff] (!%p173_p10) }
  0x14   : > { %v793_v28 = vpack.c.bf16 (!%p173_p10), %v316_v22, %v315_v21  ;;  %v795_v30 = vpack.c.bf16 (!%p173_p10), %v334_v24, %v333_v23  ;;  %v317_v31 = vld [vmem:[%s1261_s1 + $0x40] sm:$0xff] (!%p173_p10)  ;;  %v318_v32 = vld [vmem:[%s1261_s1 + $0x48] sm:$0xff] (!%p173_p10)  ;;  %v335_v33 = vld [vmem:[%s1261_s1 + $0xd0] sm:$0xff] (!%p173_p10) }
  0x15   : > { %v336_v34 = vld [vmem:[%s1261_s1 + $0xd8] sm:$0xff] (!%p173_p10)  ;;  %v797_v35 = vpack.c.bf16 (!%p173_p10), %v318_v32, %v317_v31  ;;  %v319_v37 = vld [vmem:[%s1261_s1 + $0x50] sm:$0xff] (!%p173_p10)  ;;  %v337_v39 = vld [vmem:[%s1261_s1 + $0xe0] sm:$0xff] (!%p173_p10) }
  0x16   : > { %s1274_s5 = smov (!%p208_p11, %s688_s5), 31  ;;  %786 = vmatpush3.bf16.msra.mxu0 %v785_v13  ;;  %820 = vmatpush3.bf16.msra.mxu1 %v785_v13  ;;  %v799_v36 = vpack.c.bf16 %v336_v34, %v335_v33  ;;  %v320_v38 = vld [vmem:[%s1261_s1 + $0x58] sm:$0xff]  ;;  %v338_v40 = vld [vmem:[%s1261_s1 + $0xe8] sm:$0xff]  ;;  %v321_v43 = vld [vmem:[%s1261_s1 + $0x60] sm:$0xff] }
  0x17   : > { %s697_s8 = sshll.u32 %s1274_s5, 3  ;;  %788 = vmatprep.subr.bf16.mxu0 %v787_v14  ;;  %813 = vmatprep.subr.bf16.mxu1 %v787_v14  ;;  %v801_v41 = vpack.c.bf16 %v320_v38, %v319_v37  ;;  %v803_v42 = vpack.c.bf16 %v338_v40, %v337_v39  ;;  %v322_v44 = vld [vmem:[%s1261_s1 + $0x68] sm:$0xff]  ;;  %v339_v45 = vld [vmem:[%s1261_s1 + $0xf0] sm:$0xff]  ;;  %v340_v46 = vld [vmem:[%s1261_s1 + $0xf8] sm:$0xff]  ;;  %s891_s5 = scalar_lea.vmem %s890_s21, 4096 }
  0x18   : > { %s1089_s23 = scalar_lea.vmem %s1260_s0, %s697_s8  ;;  %v805_v47 = vpack.c.bf16 %v322_v44, %v321_v43  ;;  %v807_v48 = vpack.c.bf16 %v340_v46, %v339_v45  ;;  %v323_v49 = vld [vmem:[%s1261_s1 + $0x70] sm:$0xff]  ;;  %v324_v50 = vld [vmem:[%s1261_s1 + $0x78] sm:$0xff]  ;;  %v1167_v38 = vld [vmem:[%s1262_s2] ss:$0 sm:$0xff] }
  0x19   : > { %v245_v25 = vld [vmem:[%s1089_s23] sm:$0xff]  ;;  %v809_v51 = vpack.c.bf16 %v324_v50, %v323_v49  ;;  %v246_v52 = vld [vmem:[%s1089_s23 + $0x8] sm:$0xff]  ;;  %v247_v58 = vld [vmem:[%s1089_s23 + $0x10] sm:$0xff] }
  0x1a   : > { %v262_v26 = vunpack.c.h.bf16 %v245_v25  ;;  %v253_v27 = vld [vmem:[%s1089_s23 + $0x40] sm:$0xff]  ;;  %790 = vmatpush3.bf16.msra.mxu0 %v789_v19  ;;  %821 = vmatpush3.bf16.msra.mxu1 %v789_v19  ;;  %v254_v53 = vld [vmem:[%s1089_s23 + $0x48] sm:$0xff]  ;;  %v261_v54 = vunpack.c.l.bf16 %v245_v25  ;;  %v264_v56 = vunpack.c.h.bf16 %v246_v52  ;;  %v255_v59 = vld [vmem:[%s1089_s23 + $0x50] sm:$0xff]  ;;  %v263_v60 = vunpack.c.l.bf16 %v246_v52 }
  0x1b   : > { %v278_v29 = vunpack.c.h.bf16 %v253_v27  ;;  %792 = vmatprep.subr.bf16.mxu0 %v791_v20  ;;  %814 = vmatprep.subr.bf16.mxu1 %v791_v20  ;;  %v277_v55 = vunpack.c.l.bf16 %v253_v27  ;;  %v280_v57 = vunpack.c.h.bf16 %v254_v53  ;;  %v279_v61 = vunpack.c.l.bf16 %v254_v53  ;;  %v248_v0 = vld [vmem:[%s1089_s23 + $0x18] sm:$0xff]  ;;  %v249_v6 = vld [vmem:[%s1089_s23 + $0x20] sm:$0xff]  ;;  %v250_v12 = vld [vmem:[%s1089_s23 + $0x28] sm:$0xff] }
  0x1c   : > { %405 = vmatprep.mubr.f32.mxu0 %v262_v26  ;;  %v266_v62 = vunpack.c.h.bf16 %v247_v58  ;;  %v282_v63 = vunpack.c.h.bf16 %v255_v59  ;;  %v256_v1 = vld [vmem:[%s1089_s23 + $0x58] sm:$0xff]  ;;  %v265_v2 = vunpack.c.l.bf16 %v247_v58  ;;  %v281_v3 = vunpack.c.l.bf16 %v255_v59  ;;  %v257_v7 = vld [vmem:[%s1089_s23 + $0x60] sm:$0xff]  ;;  %v258_v13 = vld [vmem:[%s1089_s23 + $0x68] sm:$0xff] }
  0x1d   : > { %445 = vmatprep.mubr.f32.mxu1 %v278_v29  ;;  %v268_v4 = vunpack.c.h.bf16 %v248_v0  ;;  %v284_v5 = vunpack.c.h.bf16 %v256_v1  ;;  %v267_v8 = vunpack.c.l.bf16 %v248_v0  ;;  %v283_v9 = vunpack.c.l.bf16 %v256_v1  ;;  %v251_v18 = vld [vmem:[%s1089_s23 + $0x30] sm:$0xff]  ;;  %v252_v24 = vld [vmem:[%s1089_s23 + $0x38] sm:$0xff] }
  0x1e   : > { %794 = vmatpush3.bf16.msra.mxu0 %v793_v28  ;;  %822 = vmatpush3.bf16.msra.mxu1 %v793_v28  ;;  %v270_v10 = vunpack.c.h.bf16 %v249_v6  ;;  %v286_v11 = vunpack.c.h.bf16 %v257_v7  ;;  %v269_v14 = vunpack.c.l.bf16 %v249_v6  ;;  %v285_v15 = vunpack.c.l.bf16 %v257_v7  ;;  %v259_v19 = vld [vmem:[%s1089_s23 + $0x70] sm:$0xff]  ;;  %v260_v25 = vld [vmem:[%s1089_s23 + $0x78] sm:$0xff]  ;;  %s687_s23 = sshll.u32 %s203_s29, 7 }
  0x1f   : > { %796 = vmatprep.subr.bf16.mxu0 %v795_v30  ;;  %815 = vmatprep.subr.bf16.mxu1 %v795_v30  ;;  %v272_v16 = vunpack.c.h.bf16 %v250_v12  ;;  %v288_v17 = vunpack.c.h.bf16 %v258_v13  ;;  %v271_v20 = vunpack.c.l.bf16 %v250_v12  ;;  %v287_v21 = vunpack.c.l.bf16 %v258_v13  ;;  %s1171_s6 = scalar_lea.vmem [#allocation2], %s687_s23 }
  0x20   : > { %v274_v22 = vunpack.c.h.bf16 %v251_v18  ;;  %v290_v23 = vunpack.c.h.bf16 %v259_v19  ;;  %v273_v26 = vunpack.c.l.bf16 %v251_v18  ;;  %v289_v27 = vunpack.c.l.bf16 %v259_v19  ;;  %s590_s8 = sshll.u32 %s1171_s6, 4  ;;  %s1206_s8 = int_to_ptr.vmem [resolvable:$true] %s590_s8 }
  0x21   : > { %v276_v28 = vunpack.c.h.bf16 %v252_v24  ;;  %v292_v29 = vunpack.c.h.bf16 %v260_v25  ;;  %v275_v30 = vunpack.c.l.bf16 %v252_v24  ;;  %v291_v31 = vunpack.c.l.bf16 %v260_v25  ;;  %s885_s18 = scalar_lea.vmem %s1206_s8, 2048  ;;  %p892_p1 = scmp.lt.s32.totalorder %s1206_s8, %s890_s21 }
  0x22   : > { %798 = vmatpush3.bf16.msra.mxu0 %v797_v35  ;;  %823 = vmatpush3.bf16.msra.mxu1 %v797_v35  ;;  %p886_p12 = scmp.ne.s32.totalorder %s1206_s8, %s885_s18  ;;  %p893_p2 = scmp.lt.s32.totalorder %s891_s5, %s885_s18 }
  0x23   : > { %800 = vmatprep.subr.bf16.mxu0 %v799_v36  ;;  %816 = vmatprep.subr.bf16.mxu1 %v799_v36 }
  0x24   : > { %p887_p13 = pnand %p886_p12, %p1028_p4  ;;  %p894_p3 = por %p893_p2, %p892_p1 }
  0x26   : > { %802 = vmatpush3.bf16.msra.mxu0 %v801_v41  ;;  %824 = vmatpush3.bf16.msra.mxu1 %v801_v41  ;;  %p888_p0 = pneg %p887_p13 }
  0x27   : > { %804 = vmatprep.subr.bf16.mxu0 %v803_v42  ;;  %817 = vmatprep.subr.bf16.mxu1 %v803_v42 }
  0x28   : > { %p895_p5 = pnand %p894_p3, %p888_p0 }
  0x2a   : > { %806 = vmatpush3.bf16.msra.mxu0 %v805_v47  ;;  %825 = vmatpush3.bf16.msra.mxu1 %v805_v47 }
  0x2b   : > { %808 = vmatprep.subr.bf16.mxu0 %v807_v48  ;;  %818 = vmatprep.subr.bf16.mxu1 %v807_v48 }
  0x2e   : > { %810 = vmatpush3.bf16.msra.mxu0 %v809_v51  ;;  %826 = vmatpush3.bf16.msra.mxu1 %v809_v51 }
  0x31   : > { %406 = vmatmul.mubr.f32.vlgmr.msra.gmra.mrb[0].mxu0 %v261_v54  ;;  %446 = vmatmul.mubr.f32.vlgmr.msra.gmra.mrb[0].mxu1 %v277_v55 }
  0x32   : > { %410 = vmatprep.mubr.f32.mxu0 %v264_v56  ;;  %450 = vmatprep.mubr.f32.mxu1 %v280_v57 }
  0x35   : > { %411 = vmatmul.mubr.f32.gmra.mrb[2].mxu0 %v263_v60  ;;  %451 = vmatmul.mubr.f32.gmra.mrb[2].mxu1 %v279_v61 }
  0x36   : > { %415 = vmatprep.mubr.f32.mxu0 %v266_v62  ;;  %455 = vmatprep.mubr.f32.mxu1 %v282_v63 }
  0x39   : > { %416 = vmatmul.mubr.f32.gmra.mrb[4].mxu0 %v265_v2  ;;  %456 = vmatmul.mubr.f32.gmra.mrb[4].mxu1 %v281_v3 }
  0x3a   : > { %420 = vmatprep.mubr.f32.mxu0 %v268_v4  ;;  %460 = vmatprep.mubr.f32.mxu1 %v284_v5 }
  0x3d   : > { %421 = vmatmul.mubr.f32.gmra.mrb[6].mxu0 %v267_v8  ;;  %461 = vmatmul.mubr.f32.gmra.mrb[6].mxu1 %v283_v9 }
  0x3e   : > { %425 = vmatprep.mubr.f32.mxu0 %v270_v10  ;;  %465 = vmatprep.mubr.f32.mxu1 %v286_v11 }
  0x41   : > { %426 = vmatmul.mubr.f32.gmra.mrb[8].mxu0 %v269_v14  ;;  %466 = vmatmul.mubr.f32.gmra.mrb[8].mxu1 %v285_v15 }
  0x42   : > { %430 = vmatprep.mubr.f32.mxu0 %v272_v16  ;;  %470 = vmatprep.mubr.f32.mxu1 %v288_v17 }
  0x45   : > { %431 = vmatmul.mubr.f32.gmra.mrb[10].mxu0 %v271_v20  ;;  %471 = vmatmul.mubr.f32.gmra.mrb[10].mxu1 %v287_v21 }
  0x46   : > { %435 = vmatprep.mubr.f32.mxu0 %v274_v22  ;;  %475 = vmatprep.mubr.f32.mxu1 %v290_v23 }
  0x49   : > { %436 = vmatmul.mubr.f32.gmra.mrb[12].mxu0 %v273_v26  ;;  %476 = vmatmul.mubr.f32.gmra.mrb[12].mxu1 %v289_v27 }
  0x4a   : > { %440 = vmatprep.mubr.f32.mxu0 %v276_v28  ;;  %480 = vmatprep.mubr.f32.mxu1 %v292_v29 }
  0x4d   : > { %441 = vmatmul.mubr.f32.gmra.mrb[14].mxu0 %v275_v30  ;;  %481 = vmatmul.mubr.f32.gmra.mrb[14].mxu1 %v291_v31 }
 0x104   : > { %v731_v32 = vpop.f32.mrb[0].mxu0  ;;  %v755_v33 = vpop.f32.mrb[0].mxu1 }
 0x105   : > { %v732_v34 = vpop.f32.mrb[1].mxu0  ;;  %v756_v35 = vpop.f32.mrb[1].mxu1 }
 0x106   : > { %v733_v36 = vadd.f32 %v732_v34, %v731_v32  ;;  %v757_v37 = vadd.f32 %v756_v35, %v755_v33 }
 0x108   : > { %v734_v39 = vpop.f32.mrb[2].mxu0  ;;  %v758_v40 = vpop.f32.mrb[2].mxu1  ;;  %v544_v43 = vadd.f32 %v733_v36, %v1167_v38  ;;  %v552_v44 = vadd.f32 %v757_v37, %v1167_v38 }
 0x109   : > { %v735_v41 = vpop.f32.mrb[3].mxu0  ;;  %v759_v42 = vpop.f32.mrb[3].mxu1 }
 0x10a   : > { %v736_v45 = vadd.f32 %v735_v41, %v734_v39  ;;  %v760_v46 = vadd.f32 %v759_v42, %v758_v40  ;;  %560 = vst [vmem:[%s1171_s6] sm:$0xff] %v544_v43  ;;  %568 = vst [vmem:[%s1171_s6 + $0x40] sm:$0xff] %v552_v44 }
 0x10c   : > { %v737_v47 = vpop.f32.mrb[4].mxu0  ;;  %v761_v48 = vpop.f32.mrb[4].mxu1  ;;  %v545_v51 = vadd.f32 %v736_v45, %v1167_v38  ;;  %v553_v52 = vadd.f32 %v760_v46, %v1167_v38 }
 0x10d   : > { %v738_v49 = vpop.f32.mrb[5].mxu0  ;;  %v762_v50 = vpop.f32.mrb[5].mxu1 }
 0x10e   : > { %v739_v53 = vadd.f32 %v738_v49, %v737_v47  ;;  %v763_v54 = vadd.f32 %v762_v50, %v761_v48  ;;  %561 = vst [vmem:[%s1171_s6 + $0x8] sm:$0xff] %v545_v51  ;;  %569 = vst [vmem:[%s1171_s6 + $0x48] sm:$0xff] %v553_v52 }
 0x110   : > { %v740_v55 = vpop.f32.mrb[6].mxu0  ;;  %v764_v56 = vpop.f32.mrb[6].mxu1  ;;  %v546_v59 = vadd.f32 %v739_v53, %v1167_v38  ;;  %v554_v60 = vadd.f32 %v763_v54, %v1167_v38 }
 0x111   : > { %v741_v57 = vpop.f32.mrb[7].mxu0  ;;  %v765_v58 = vpop.f32.mrb[7].mxu1 }
 0x112   : > { %v742_v61 = vadd.f32 %v741_v57, %v740_v55  ;;  %v766_v62 = vadd.f32 %v765_v58, %v764_v56  ;;  %562 = vst [vmem:[%s1171_s6 + $0x10] sm:$0xff] %v546_v59  ;;  %570 = vst [vmem:[%s1171_s6 + $0x50] sm:$0xff] %v554_v60 }
 0x114   : > { %v743_v63 = vpop.f32.mrb[8].mxu0  ;;  %v767_v0 = vpop.f32.mrb[8].mxu1  ;;  %v547_v3 = vadd.f32 %v742_v61, %v1167_v38  ;;  %v555_v4 = vadd.f32 %v766_v62, %v1167_v38 }
 0x115   : > { %v744_v1 = vpop.f32.mrb[9].mxu0  ;;  %v768_v2 = vpop.f32.mrb[9].mxu1 }
 0x116   : > { %v745_v5 = vadd.f32 %v744_v1, %v743_v63  ;;  %v769_v6 = vadd.f32 %v768_v2, %v767_v0  ;;  %563 = vst [vmem:[%s1171_s6 + $0x18] sm:$0xff] %v547_v3  ;;  %571 = vst [vmem:[%s1171_s6 + $0x58] sm:$0xff] %v555_v4 }
 0x118   : > { %v746_v7 = vpop.f32.mrb[10].mxu0  ;;  %v770_v8 = vpop.f32.mrb[10].mxu1  ;;  %v548_v11 = vadd.f32 %v745_v5, %v1167_v38  ;;  %v556_v12 = vadd.f32 %v769_v6, %v1167_v38 }
 0x119   : > { %v747_v9 = vpop.f32.mrb[11].mxu0  ;;  %v771_v10 = vpop.f32.mrb[11].mxu1 }
 0x11a   : > { %v748_v13 = vadd.f32 %v747_v9, %v746_v7  ;;  %v772_v14 = vadd.f32 %v771_v10, %v770_v8  ;;  %564 = vst [vmem:[%s1171_s6 + $0x20] sm:$0xff] %v548_v11  ;;  %572 = vst [vmem:[%s1171_s6 + $0x60] sm:$0xff] %v556_v12 }
 0x11c   : > { %v749_v15 = vpop.f32.mrb[12].mxu0  ;;  %v773_v16 = vpop.f32.mrb[12].mxu1  ;;  %v549_v19 = vadd.f32 %v748_v13, %v1167_v38  ;;  %v557_v20 = vadd.f32 %v772_v14, %v1167_v38 }
 0x11d   : > { %v750_v17 = vpop.f32.mrb[13].mxu0  ;;  %v774_v18 = vpop.f32.mrb[13].mxu1 }
 0x11e   : > { %v751_v21 = vadd.f32 %v750_v17, %v749_v15  ;;  %v775_v22 = vadd.f32 %v774_v18, %v773_v16  ;;  %565 = vst [vmem:[%s1171_s6 + $0x28] sm:$0xff] %v549_v19  ;;  %573 = vst [vmem:[%s1171_s6 + $0x68] sm:$0xff] %v557_v20 }
 0x120   : > { %v752_v23 = vpop.f32.mrb[14].mxu0  ;;  %v776_v24 = vpop.f32.mrb[14].mxu1  ;;  %v550_v27 = vadd.f32 %v751_v21, %v1167_v38  ;;  %v558_v28 = vadd.f32 %v775_v22, %v1167_v38 }
 0x121   : > { %v753_v25 = vpop.f32.mrb[15].mxu0  ;;  %v777_v26 = vpop.f32.mrb[15].mxu1 }
 0x122   : > { %v754_v29 = vadd.f32 %v753_v25, %v752_v23  ;;  %v778_v30 = vadd.f32 %v777_v26, %v776_v24  ;;  %566 = vst [vmem:[%s1171_s6 + $0x30] sm:$0xff] %v550_v27  ;;  %574 = vst [vmem:[%s1171_s6 + $0x70] sm:$0xff] %v558_v28 }
 0x124   : > { %v551_v31 = vadd.f32 %v754_v29, %v1167_v38  ;;  %v559_v32 = vadd.f32 %v778_v30, %v1167_v38 }
 0x126   : > { %567 = vst [vmem:[%s1171_s6 + $0x38] sm:$0xff] %v551_v31  ;;  %575 = vst [vmem:[%s1171_s6 + $0x78] sm:$0xff] %v559_v32 }
 0x127   : > { %898 = shalt.err (!%p895_p5)
}
 0x128   : > { %s899_s26 = scalar_lea.hbm %s1204_s11, 2048  ;;  %s903_s29 = scalar_lea.hbm %s1263_s3, 4096 }
 0x129   : > { %p900_p6 = scmp.ne.s32.totalorder %s1204_s11, %s899_s26  ;;  %p904_p10 = scmp.lt.u32.totalorder %s1204_s11, %s1263_s3 }
 0x12a   : > { %p905_p11 = scmp.lt.u32.totalorder %s903_s29, %s899_s26  ;;  %p907_p13 = scmp.lt.u32.totalorder %s899_s26, %s1204_s11 }
 0x12b   : > { %p901_p7 = pnand %p900_p6, %p1028_p4 }
 0x12c   : > { %p906_p12 = por %p905_p11, %p904_p10 }
 0x12d   : > { %p902_p9 = pneg %p901_p7 }
 0x12e   : > { %p908_p0 = por %p907_p13, %p906_p12 }
 0x130   : > { %p909_p1 = pnand %p908_p0, %p902_p9 }
 0x132   : > { %912 = shalt.err (!%p909_p1)
}
 0x133   : > { %s966_s4 = smov 128   ;;  %s967_s6 = smov 8  }
 0x134   : > { %827 = dma.vmem_to_hbm [thread:$0]  (%p1028_p4), %s1206_s8, 2048, %s1204_s11, %s1214_s15, %s966_s4, %s966_s4, %s967_s6  }
 0x135 PF: > { %p833_p2 = scmp.ge.s32.totalorder %s963_s17, 2  ;;  %s605_s7 = sand.u32 1, %s943_s12  }
 0x136   : > { %s606_s9 = scalar_lea.sflag [#allocation3], %s605_s7 }
 0x137   : > { %p830_p3 = pnand %p833_p2, %p1035_p8 }
 0x139   : > { %938 = dma.done.wait (!%p830_p3), %s606_s9, 2048  }
 0x13a   : > { %940 = vsyncadd (!%p830_p3), %s606_s9, 4294965248  ;;  %s16_s17 = sadd.s32 1, %s963_s17   ;;  %s1266_s12 = smov %s947_s13 }
 0x13b   : > { %p13_p5 = scmp.ge.s32.totalorder %s16_s17, 4   ;;  %s1267_s13 = smov %s951_s14 }
 0x13c   : > { %s1268_s14 = smov %s1041_s25  ;;  %s1269_s15 = smov %s959_s16 }
 0x13d   : > { %s1270_s16 = smov %s1272_s20  ;;  %15 = sbr.rel (!%p13_p5) target bundleno = 4 (0x4), region = 78 }
 0x144   :  { %611 = vsyncpa [#allocation3], 1 }
 0x145   :  { %613 = vsyncpa [#allocation3 + $0x1], 1 }

</bundles_post_ra>
